<compile_context>
chip_gen: v7x
topology: tpu7x:2x2x1
jax: 0.10.0
libtpu: 0.0.40
codegen_flags: <defaults>
</compile_context>

<pallas_src>
import jax
import jax.numpy as jnp
from jax.experimental import pallas as pl
from jax.experimental.pallas import tpu as pltpu

_LANE = 128   # vreg lane width (last dim)
_SUB = 8      # f32 sublane count (second-to-last dim)


def _round_up(x: int, m: int) -> int:
    return ((x + m - 1) // m) * m


def actor_kernel(x_ref, w1_ref, b1_ref, w2_ref, b2_ref, w3_ref, b3_ref, o_ref):
    """Fused 3-layer MLP. bf16 MXU inputs, f32 accumulate / bias / activations."""
    x = x_ref[...].astype(jnp.bfloat16)                          # (tb, n_states)

    # Layer 1: Linear + ReLU
    h1 = jnp.dot(x, w1_ref[...], preferred_element_type=jnp.float32)
    h1 = jnp.maximum(h1 + b1_ref[0:1, :], 0.0)                   # f32 (tb, H)

    # Layer 2: Linear + ReLU
    h2 = jnp.dot(h1.astype(jnp.bfloat16), w2_ref[...],
                 preferred_element_type=jnp.float32)
    h2 = jnp.maximum(h2 + b2_ref[0:1, :], 0.0)                   # f32 (tb, H)

    # Layer 3: Linear + Tanh
    out = jnp.dot(h2.astype(jnp.bfloat16), w3_ref[...],
                  preferred_element_type=jnp.float32)
    o_ref[...] = jnp.tanh(out + b3_ref[0:1, :]).astype(o_ref.dtype)


def prepare_actor_params(w1, b1, w2, b2, w3, b3):
    """One-time parameter prep (do NOT call per forward): pad hidden/action
    dims to lane multiples, cast weights to bf16, biases to sublane-aligned
    f32 blocks. Zero padding is exact for this MLP."""
    n_states, hidden = w1.shape
    n_actions = w3.shape[1]
    H = _round_up(hidden, _LANE)
    A = _round_up(n_actions, _LANE)
    bf16, f32 = jnp.bfloat16, jnp.float32

    w1_p = jnp.zeros((n_states, H), bf16).at[:, :hidden].set(w1.astype(bf16))
    w2_p = jnp.zeros((H, H), bf16).at[:hidden, :hidden].set(w2.astype(bf16))
    w3_p = jnp.zeros((H, A), bf16).at[:hidden, :n_actions].set(w3.astype(bf16))

    def pad_bias(b, n, n_pad):
        b = jnp.broadcast_to(jnp.reshape(b, (1, n)).astype(f32), (_SUB, n))
        return jnp.zeros((_SUB, n_pad), f32).at[:, :n].set(b)

    params = {
        "w1": w1_p, "b1": pad_bias(b1, hidden, H),
        "w2": w2_p, "b2": pad_bias(b2, hidden, H),
        "w3": w3_p, "b3": pad_bias(b3, n_actions, A),
        "n_states": n_states, "hidden": hidden, "n_actions": n_actions,
        "H": H, "A": A,
    }
    return params


def actor_forward(state, params, *, batch_tile=None):
    """Hot path: only batch padding (if needed) happens outside the kernel."""
    B, n_states = state.shape
    assert n_states == params["n_states"], "state dim mismatch with prepared params"
    H, A = params["H"], params["A"]
    n_actions = params["n_actions"]

    # Batch tile: single tile only for tiny batches; otherwise guarantee
    # >= 2 grid steps (both v7x TensorCores busy via "parallel" semantics);
    # 512-row tiles for very large batches (amortize ~0.35us/step overhead).
    if batch_tile is not None:
        tb = _round_up(batch_tile, _SUB)
    elif B <= 16:
        tb = _round_up(B, _SUB)
    elif B <= 1024:
        tb = _round_up(pl.cdiv(B, 2), _SUB)
    else:
        tb = 512
    Bp = _round_up(B, tb)
    grid = (Bp // tb,)

    # Pad batch only when necessary (no-op for aligned batches).
    if Bp == B:
        x_p = state
    else:
        x_p = jnp.zeros((Bp, n_states), state.dtype).at[:B].set(state)

    # VMEM budget: double-buffered x/out streams, single-buffered resident
    # weights/biases, f32 intermediates; 2x headroom, clamped to ~80% of
    # this chip's VMEM capacity (v5e/v6e: 128 MiB, v7x: 64 MiB).
    x_bytes = jnp.dtype(state.dtype).itemsize
    vmem_est = (2 * tb * n_states * x_bytes             # x (double-buffered)
                + 2 * tb * A * 2                        # bf16 out (double-buffered)
                + (n_states * H + H * H + H * A) * 2    # resident bf16 weights
                + 3 * _SUB * max(H, A) * 4              # resident f32 biases
                + tb * (2 * H + A) * 4)                 # f32 intermediates
    try:
        vmem_cap = int(pltpu.get_tpu_info().vmem_capacity_bytes)
    except Exception:
        vmem_cap = 64 * 1024 * 1024                     # conservative (v7x) fallback
    vmem_limit = int(min(max(2 * vmem_est, 16 * 1024 * 1024),
                         int(0.8 * vmem_cap)))

    def _call(single_buffer_weights):
        # Resident operands: constant index_map -> never re-DMA'd after step 0;
        # request a single VMEM buffer for them to free headroom.
        if single_buffer_weights and hasattr(pl, "Buffered"):
            res = {"pipeline_mode": pl.Buffered(1)}
        else:
            res = {}
        return pl.pallas_call(
            actor_kernel,
            out_shape=jax.ShapeDtypeStruct((Bp, A), jnp.bfloat16),
            grid_spec=pltpu.PrefetchScalarGridSpec(
                num_scalar_prefetch=0,
                grid=grid,
                in_specs=[
                    pl.BlockSpec((tb, n_states), lambda i: (i, 0)),        # x tile (unpadded lanes)
                    pl.BlockSpec((n_states, H), lambda i: (0, 0), **res),  # W1
                    pl.BlockSpec((_SUB, H), lambda i: (0, 0), **res),      # b1
                    pl.BlockSpec((H, H), lambda i: (0, 0), **res),         # W2
                    pl.BlockSpec((_SUB, H), lambda i: (0, 0), **res),      # b2
                    pl.BlockSpec((H, A), lambda i: (0, 0), **res),         # W3
                    pl.BlockSpec((_SUB, A), lambda i: (0, 0), **res),      # b3
                ],
                out_specs=pl.BlockSpec((tb, A), lambda i: (i, 0)),         # lane-dense bf16 out
            ),
            compiler_params=pltpu.CompilerParams(
                dimension_semantics=("parallel",),
                vmem_limit_bytes=vmem_limit,
            ),
        )(x_p, params["w1"], params["b1"], params["w2"], params["b2"],
          params["w3"], params["b3"])

    try:
        out_p = _call(True)
    except Exception:
        # Fallback for JAX versions that reject single-buffered resident
        # blocks in the auto-pipelined path; default double-buffering is
        # still correct (just ~2x weight VMEM).
        out_p = _call(False)

    return out_p[:B, :n_actions].astype(state.dtype)


def init_actor_params(key, n_actions, n_states, hidden_size, dtype=jnp.float32):
    """Deterministic init mirroring nn.Linear's U(-1/sqrt(fan_in), 1/sqrt(fan_in)).
    Weights stored as (in, out) = torch_weight.T; biases as (1, out)."""
    keys = jax.random.split(key, 6)

    def linear(kw, kb, fan_in, fan_out):
        bound = 1.0 / jnp.sqrt(fan_in)
        w = jax.random.uniform(kw, (fan_in, fan_out), dtype, -bound, bound)
        b = jax.random.uniform(kb, (1, fan_out), dtype, -bound, bound)
        return w, b

    w1, b1 = linear(keys[0], keys[1], n_states, hidden_size)
    w2, b2 = linear(keys[2], keys[3], hidden_size, hidden_size)
    w3, b3 = linear(keys[4], keys[5], hidden_size, n_actions)
    return w1, b1, w2, b2, w3, b3


def actor_reference(state, w1, b1, w2, b2, w3, b3):
    h1 = jnp.maximum(state @ w1 + b1, 0.0)
    h2 = jnp.maximum(h1 @ w2 + b2, 0.0)
    return jnp.tanh(h2 @ w3 + b3)


if __name__ == "__main__":
    # Small shapes consistent with the module:
    # batch=8, n_states=16, hidden_size=32, n_actions=4.
    batch, n_states, hidden_size, n_actions = 8, 16, 32, 4

    key = jax.random.PRNGKey(0)
    k_params, k_state, k_state2 = jax.random.split(key, 3)

    raw_params = init_actor_params(k_params, n_actions, n_states, hidden_size)
    prepared = prepare_actor_params(*raw_params)   # one-time prep (hoisted out of hot path)

    # Case 1: tiny batch, single grid step, no batch padding needed.
    state = jax.random.normal(k_state, (batch, n_states), dtype=jnp.float32)
    out = jax.block_until_ready(actor_forward(state, prepared))
    ref = actor_reference(state, *raw_params)
    assert out.shape == (batch, n_actions), out.shape
    # bf16 matmul inputs / bf16 output with f32 accumulation -> relaxed tolerance.
    assert jnp.allclose(out, ref, atol=2e-2, rtol=2e-2), "mismatch vs reference (case 1)"

    # Case 2: batch > 16 -> >= 2 grid steps (exercises batch padding + multi-tile).
    state2 = jax.random.normal(k_state2, (40, n_states), dtype=jnp.float32)
    out2 = jax.block_until_ready(actor_forward(state2, prepared))
    ref2 = actor_reference(state2, *raw_params)
    assert out2.shape == (40, n_actions), out2.shape
    assert jnp.allclose(out2, ref2, atol=2e-2, rtol=2e-2), "mismatch vs reference (case 2)"

    print("KERNEL_OK")
</pallas_src>

<mosaic_0001>
module attributes {stable_mosaic.version = 11 : i64} {
  func.func @actor_kernel(%arg0: i32, %arg1: memref<8x16xf32, #tpu.memory_space<vmem>>, %arg2: memref<16x128xbf16, #tpu.memory_space<vmem>>, %arg3: memref<8x128xf32, #tpu.memory_space<vmem>>, %arg4: memref<128x128xbf16, #tpu.memory_space<vmem>>, %arg5: memref<8x128xf32, #tpu.memory_space<vmem>>, %arg6: memref<128x128xbf16, #tpu.memory_space<vmem>>, %arg7: memref<8x128xf32, #tpu.memory_space<vmem>>, %arg8: memref<8x128xbf16, #tpu.memory_space<vmem>>) attributes {dimension_semantics = [#tpu.dimension_semantics<parallel>], iteration_bounds = array<i64: 1>, scalar_prefetch = 0 : i64, scratch_operands = 0 : i64, tpu.core_type = #tpu.core_type<tc>, window_params = [{transform_indices = @transform_0, window_bounds = array<i64: 8, 16>}, {pipeline_mode = #tpu.pipeline_mode<synchronous>, transform_indices = @transform_1, window_bounds = array<i64: 16, 128>}, {pipeline_mode = #tpu.pipeline_mode<synchronous>, transform_indices = @transform_2, window_bounds = array<i64: 8, 128>}, {pipeline_mode = #tpu.pipeline_mode<synchronous>, transform_indices = @transform_3, window_bounds = array<i64: 128, 128>}, {pipeline_mode = #tpu.pipeline_mode<synchronous>, transform_indices = @transform_4, window_bounds = array<i64: 8, 128>}, {pipeline_mode = #tpu.pipeline_mode<synchronous>, transform_indices = @transform_5, window_bounds = array<i64: 128, 128>}, {pipeline_mode = #tpu.pipeline_mode<synchronous>, transform_indices = @transform_6, window_bounds = array<i64: 8, 128>}, {transform_indices = @transform_7, window_bounds = array<i64: 8, 128>}]} {
    %c0 = arith.constant 0 : index
    %c0_0 = arith.constant 0 : index
    %0 = vector.load %arg1[%c0, %c0_0] : memref<8x16xf32, #tpu.memory_space<vmem>>, vector<8x16xf32>
    %1 = arith.truncf %0 : vector<8x16xf32> to vector<8x16xbf16>
    %c0_1 = arith.constant 0 : index
    %c0_2 = arith.constant 0 : index
    %2 = vector.load %arg2[%c0_1, %c0_2] : memref<16x128xbf16, #tpu.memory_space<vmem>>, vector<16x128xbf16>
    %cst = arith.constant dense<0.000000e+00> : vector<8x128xf32>
    %3 = tpu.matmul %1, %2, %cst {dimension_numbers = #tpu.dot_dimension_numbers<[1], [0], [0], [1], [0, 0, 1, 1], [], []>} : vector<8x16xbf16>, vector<16x128xbf16>, vector<8x128xf32> -> vector<8x128xf32>
    %c0_3 = arith.constant 0 : index
    %c0_4 = arith.constant 0 : index
    %4 = vector.load %arg3[%c0_3, %c0_4] : memref<8x128xf32, #tpu.memory_space<vmem>>, vector<1x128xf32>
    %5 = vector.broadcast %4 : vector<1x128xf32> to vector<8x128xf32>
    %6 = arith.addf %3, %5 : vector<8x128xf32>
    %cst_5 = arith.constant 0.000000e+00 : f32
    %7 = vector.broadcast %cst_5 : f32 to vector<8x128xf32>
    %8 = arith.maximumf %6, %7 : vector<8x128xf32>
    %9 = arith.truncf %8 : vector<8x128xf32> to vector<8x128xbf16>
    %c0_6 = arith.constant 0 : index
    %c0_7 = arith.constant 0 : index
    %10 = vector.load %arg4[%c0_6, %c0_7] : memref<128x128xbf16, #tpu.memory_space<vmem>>, vector<128x128xbf16>
    %cst_8 = arith.constant dense<0.000000e+00> : vector<8x128xf32>
    %11 = tpu.matmul %9, %10, %cst_8 {dimension_numbers = #tpu.dot_dimension_numbers<[1], [0], [0], [1], [0, 0, 1, 1], [], []>} : vector<8x128xbf16>, vector<128x128xbf16>, vector<8x128xf32> -> vector<8x128xf32>
    %c0_9 = arith.constant 0 : index
    %c0_10 = arith.constant 0 : index
    %12 = vector.load %arg5[%c0_9, %c0_10] : memref<8x128xf32, #tpu.memory_space<vmem>>, vector<1x128xf32>
    %13 = vector.broadcast %12 : vector<1x128xf32> to vector<8x128xf32>
    %14 = arith.addf %11, %13 : vector<8x128xf32>
    %cst_11 = arith.constant 0.000000e+00 : f32
    %15 = vector.broadcast %cst_11 : f32 to vector<8x128xf32>
    %16 = arith.maximumf %14, %15 : vector<8x128xf32>
    %17 = arith.truncf %16 : vector<8x128xf32> to vector<8x128xbf16>
    %c0_12 = arith.constant 0 : index
    %c0_13 = arith.constant 0 : index
    %18 = vector.load %arg6[%c0_12, %c0_13] : memref<128x128xbf16, #tpu.memory_space<vmem>>, vector<128x128xbf16>
    %cst_14 = arith.constant dense<0.000000e+00> : vector<8x128xf32>
    %19 = tpu.matmul %17, %18, %cst_14 {dimension_numbers = #tpu.dot_dimension_numbers<[1], [0], [0], [1], [0, 0, 1, 1], [], []>} : vector<8x128xbf16>, vector<128x128xbf16>, vector<8x128xf32> -> vector<8x128xf32>
    %c0_15 = arith.constant 0 : index
    %c0_16 = arith.constant 0 : index
    %20 = vector.load %arg7[%c0_15, %c0_16] : memref<8x128xf32, #tpu.memory_space<vmem>>, vector<1x128xf32>
    %21 = vector.broadcast %20 : vector<1x128xf32> to vector<8x128xf32>
    %22 = arith.addf %19, %21 : vector<8x128xf32>
    %23 = math.tanh %22 : vector<8x128xf32>
    %24 = arith.truncf %23 : vector<8x128xf32> to vector<8x128xbf16>
    %c0_17 = arith.constant 0 : index
    %c0_18 = arith.constant 0 : index
    %25 = vector.load %arg8[%c0_17, %c0_18] : memref<8x128xbf16, #tpu.memory_space<vmem>>, vector<8x128xbf16>
    tpu.vector_store %arg8[%c0_17, %c0_18], %24 {strides = array<i32>} : memref<8x128xbf16, #tpu.memory_space<vmem>>, vector<8x128xbf16>,
    return
  }
  func.func @transform_0(%arg0: i32) -> (i32, i32) {
    %c0_i32 = arith.constant 0 : i32
    %c0_i32_0 = arith.constant 0 : i32
    return %arg0, %c0_i32 : i32, i32
  }
  func.func @transform_1(%arg0: i32) -> (i32, i32) {
    %c0_i32 = arith.constant 0 : i32
    %c0_i32_0 = arith.constant 0 : i32
    %c0_i32_1 = arith.constant 0 : i32
    return %c0_i32, %c0_i32_0 : i32, i32
  }
  func.func @transform_2(%arg0: i32) -> (i32, i32) {
    %c0_i32 = arith.constant 0 : i32
    %c0_i32_0 = arith.constant 0 : i32
    %c0_i32_1 = arith.constant 0 : i32
    return %c0_i32, %c0_i32_0 : i32, i32
  }
  func.func @transform_3(%arg0: i32) -> (i32, i32) {
    %c0_i32 = arith.constant 0 : i32
    %c0_i32_0 = arith.constant 0 : i32
    %c0_i32_1 = arith.constant 0 : i32
    return %c0_i32, %c0_i32_0 : i32, i32
  }
  func.func @transform_4(%arg0: i32) -> (i32, i32) {
    %c0_i32 = arith.constant 0 : i32
    %c0_i32_0 = arith.constant 0 : i32
    %c0_i32_1 = arith.constant 0 : i32
    return %c0_i32, %c0_i32_0 : i32, i32
  }
  func.func @transform_5(%arg0: i32) -> (i32, i32) {
    %c0_i32 = arith.constant 0 : i32
    %c0_i32_0 = arith.constant 0 : i32
    %c0_i32_1 = arith.constant 0 : i32
    return %c0_i32, %c0_i32_0 : i32, i32
  }
  func.func @transform_6(%arg0: i32) -> (i32, i32) {
    %c0_i32 = arith.constant 0 : i32
    %c0_i32_0 = arith.constant 0 : i32
    %c0_i32_1 = arith.constant 0 : i32
    return %c0_i32, %c0_i32_0 : i32, i32
  }
  func.func @transform_7(%arg0: i32) -> (i32, i32) {
    %c0_i32 = arith.constant 0 : i32
    %c0_i32_0 = arith.constant 0 : i32
    return %arg0, %c0_i32 : i32, i32
  }
}

module attributes {stable_mosaic.version = 11 : i64} {
  func.func @actor_kernel(%arg0: i32, %arg1: memref<8x16xf32, #tpu.memory_space<vmem>>, %arg2: memref<16x128xbf16, #tpu.memory_space<vmem>>, %arg3: memref<8x128xf32, #tpu.memory_space<vmem>>, %arg4: memref<128x128xbf16, #tpu.memory_space<vmem>>, %arg5: memref<8x128xf32, #tpu.memory_space<vmem>>, %arg6: memref<128x128xbf16, #tpu.memory_space<vmem>>, %arg7: memref<8x128xf32, #tpu.memory_space<vmem>>, %arg8: memref<8x128xbf16, #tpu.memory_space<vmem>>) attributes {dimension_semantics = [#tpu.dimension_semantics<parallel>], iteration_bounds = array<i64: 1>, scalar_prefetch = 0 : i64, scratch_operands = 0 : i64, tpu.core_type = #tpu.core_type<tc>, window_params = [{transform_indices = @transform_0, window_bounds = array<i64: 8, 16>}, {pipeline_mode = #tpu.pipeline_mode<synchronous>, transform_indices = @transform_1, window_bounds = array<i64: 16, 128>}, {pipeline_mode = #tpu.pipeline_mode<synchronous>, transform_indices = @transform_2, window_bounds = array<i64: 8, 128>}, {pipeline_mode = #tpu.pipeline_mode<synchronous>, transform_indices = @transform_3, window_bounds = array<i64: 128, 128>}, {pipeline_mode = #tpu.pipeline_mode<synchronous>, transform_indices = @transform_4, window_bounds = array<i64: 8, 128>}, {pipeline_mode = #tpu.pipeline_mode<synchronous>, transform_indices = @transform_5, window_bounds = array<i64: 128, 128>}, {pipeline_mode = #tpu.pipeline_mode<synchronous>, transform_indices = @transform_6, window_bounds = array<i64: 8, 128>}, {transform_indices = @transform_7, window_bounds = array<i64: 8, 128>}]} {
    %c0 = arith.constant 0 : index
    %c0_0 = arith.constant 0 : index
    %0 = vector.load %arg1[%c0, %c0_0] : memref<8x16xf32, #tpu.memory_space<vmem>>, vector<8x16xf32>
    %1 = arith.truncf %0 : vector<8x16xf32> to vector<8x16xbf16>
    %c0_1 = arith.constant 0 : index
    %c0_2 = arith.constant 0 : index
    %2 = vector.load %arg2[%c0_1, %c0_2] : memref<16x128xbf16, #tpu.memory_space<vmem>>, vector<16x128xbf16>
    %cst = arith.constant dense<0.000000e+00> : vector<8x128xf32>
    %3 = tpu.matmul %1, %2, %cst {dimension_numbers = #tpu.dot_dimension_numbers<[1], [0], [0], [1], [0, 0, 1, 1], [], []>} : vector<8x16xbf16>, vector<16x128xbf16>, vector<8x128xf32> -> vector<8x128xf32>
    %c0_3 = arith.constant 0 : index
    %c0_4 = arith.constant 0 : index
    %4 = vector.load %arg3[%c0_3, %c0_4] : memref<8x128xf32, #tpu.memory_space<vmem>>, vector<1x128xf32>
    %5 = vector.broadcast %4 : vector<1x128xf32> to vector<8x128xf32>
    %6 = arith.addf %3, %5 : vector<8x128xf32>
    %cst_5 = arith.constant 0.000000e+00 : f32
    %7 = vector.broadcast %cst_5 : f32 to vector<8x128xf32>
    %8 = arith.maximumf %6, %7 : vector<8x128xf32>
    %9 = arith.truncf %8 : vector<8x128xf32> to vector<8x128xbf16>
    %c0_6 = arith.constant 0 : index
    %c0_7 = arith.constant 0 : index
    %10 = vector.load %arg4[%c0_6, %c0_7] : memref<128x128xbf16, #tpu.memory_space<vmem>>, vector<128x128xbf16>
    %cst_8 = arith.constant dense<0.000000e+00> : vector<8x128xf32>
    %11 = tpu.matmul %9, %10, %cst_8 {dimension_numbers = #tpu.dot_dimension_numbers<[1], [0], [0], [1], [0, 0, 1, 1], [], []>} : vector<8x128xbf16>, vector<128x128xbf16>, vector<8x128xf32> -> vector<8x128xf32>
    %c0_9 = arith.constant 0 : index
    %c0_10 = arith.constant 0 : index
    %12 = vector.load %arg5[%c0_9, %c0_10] : memref<8x128xf32, #tpu.memory_space<vmem>>, vector<1x128xf32>
    %13 = vector.broadcast %12 : vector<1x128xf32> to vector<8x128xf32>
    %14 = arith.addf %11, %13 : vector<8x128xf32>
    %cst_11 = arith.constant 0.000000e+00 : f32
    %15 = vector.broadcast %cst_11 : f32 to vector<8x128xf32>
    %16 = arith.maximumf %14, %15 : vector<8x128xf32>
    %17 = arith.truncf %16 : vector<8x128xf32> to vector<8x128xbf16>
    %c0_12 = arith.constant 0 : index
    %c0_13 = arith.constant 0 : index
    %18 = vector.load %arg6[%c0_12, %c0_13] : memref<128x128xbf16, #tpu.memory_space<vmem>>, vector<128x128xbf16>
    %cst_14 = arith.constant dense<0.000000e+00> : vector<8x128xf32>
    %19 = tpu.matmul %17, %18, %cst_14 {dimension_numbers = #tpu.dot_dimension_numbers<[1], [0], [0], [1], [0, 0, 1, 1], [], []>} : vector<8x128xbf16>, vector<128x128xbf16>, vector<8x128xf32> -> vector<8x128xf32>
    %c0_15 = arith.constant 0 : index
    %c0_16 = arith.constant 0 : index
    %20 = vector.load %arg7[%c0_15, %c0_16] : memref<8x128xf32, #tpu.memory_space<vmem>>, vector<1x128xf32>
    %21 = vector.broadcast %20 : vector<1x128xf32> to vector<8x128xf32>
    %22 = arith.addf %19, %21 : vector<8x128xf32>
    %23 = math.tanh %22 : vector<8x128xf32>
    %24 = arith.truncf %23 : vector<8x128xf32> to vector<8x128xbf16>
    %c0_17 = arith.constant 0 : index
    %c0_18 = arith.constant 0 : index
    %25 = vector.load %arg8[%c0_17, %c0_18] : memref<8x128xbf16, #tpu.memory_space<vmem>>, vector<8x128xbf16>
    tpu.vector_store %arg8[%c0_17, %c0_18], %24 {strides = array<i32>} : memref<8x128xbf16, #tpu.memory_space<vmem>>, vector<8x128xbf16>,
    return
  }
  func.func @transform_0(%arg0: i32) -> (i32, i32) {
    %c0_i32 = arith.constant 0 : i32
    %c0_i32_0 = arith.constant 0 : i32
    return %arg0, %c0_i32 : i32, i32
  }
  func.func @transform_1(%arg0: i32) -> (i32, i32) {
    %c0_i32 = arith.constant 0 : i32
    %c0_i32_0 = arith.constant 0 : i32
    %c0_i32_1 = arith.constant 0 : i32
    return %c0_i32, %c0_i32_0 : i32, i32
  }
  func.func @transform_2(%arg0: i32) -> (i32, i32) {
    %c0_i32 = arith.constant 0 : i32
    %c0_i32_0 = arith.constant 0 : i32
    %c0_i32_1 = arith.constant 0 : i32
    return %c0_i32, %c0_i32_0 : i32, i32
  }
  func.func @transform_3(%arg0: i32) -> (i32, i32) {
    %c0_i32 = arith.constant 0 : i32
    %c0_i32_0 = arith.constant 0 : i32
    %c0_i32_1 = arith.constant 0 : i32
    return %c0_i32, %c0_i32_0 : i32, i32
  }
  func.func @transform_4(%arg0: i32) -> (i32, i32) {
    %c0_i32 = arith.constant 0 : i32
    %c0_i32_0 = arith.constant 0 : i32
    %c0_i32_1 = arith.constant 0 : i32
    return %c0_i32, %c0_i32_0 : i32, i32
  }
  func.func @transform_5(%arg0: i32) -> (i32, i32) {
    %c0_i32 = arith.constant 0 : i32
    %c0_i32_0 = arith.constant 0 : i32
    %c0_i32_1 = arith.constant 0 : i32
    return %c0_i32, %c0_i32_0 : i32, i32
  }
  func.func @transform_6(%arg0: i32) -> (i32, i32) {
    %c0_i32 = arith.constant 0 : i32
    %c0_i32_0 = arith.constant 0 : i32
    %c0_i32_1 = arith.constant 0 : i32
    return %c0_i32, %c0_i32_0 : i32, i32
  }
  func.func @transform_7(%arg0: i32) -> (i32, i32) {
    %c0_i32 = arith.constant 0 : i32
    %c0_i32_0 = arith.constant 0 : i32
    return %arg0, %c0_i32 : i32, i32
  }
}

</mosaic_0001>

<bundles_post_ra>
// kernel: tpu_custom_call.1
= control target key start
LH: loop header
LB: loop body
LE: loop exit
PB: predicated region body
PF: predicated region fallthrough
CT: control target
= control target key end

     0   :  { %12 = vsyncpa [#allocation3], 0  ;;  %s806_s0 = inlined_call_operand.hbm [shape: f32[8,16], index: 0, kind: input, shape index: {}]   ;;  %s807_s1 = inlined_call_operand.hbm [shape: bf16[16,128], index: 1, kind: input, shape index: {}]   ;;  %s808_s2 = inlined_call_operand.hbm [shape: f32[8,128], index: 2, kind: input, shape index: {}]   ;;  %s809_s3 = inlined_call_operand.hbm [shape: bf16[128,128], index: 3, kind: input, shape index: {}]   ;;  %s810_s4 = inlined_call_operand.vmem [shape: f32[8,128], index: 4, kind: input, shape index: {}]   ;;  %s811_s5 = inlined_call_operand.hbm [shape: bf16[128,128], index: 5, kind: input, shape index: {}]   ;;  %s812_s6 = inlined_call_operand.vmem [shape: f32[8,128], index: 6, kind: input, shape index: {}]   ;;  %s813_s7 = inlined_call_operand.hbm [shape: bf16[8,128], index: 7, kind: output, shape index: {}]  }
   0x1   :  { %13 = vsyncpa [#allocation6], 0 }
   0x2   :  { %14 = vsyncpa [#allocation9], 0 }
   0x3   :  { %15 = vsyncpa [#allocation4], 0  ;;  %s649_s24 = smov [#allocation5]   ;;  %s509_s28 = scalar_lea.hbm %s807_s1, 128 }
   0x4   :  { %s31_s25 = sshll.u32 %s649_s24, 4  ;;  %p510_p0 = scmp.ne.s32.totalorder %s807_s1, %s509_s28  ;;  %s32_s25 = int_to_ptr.vmem [resolvable:$true] %s31_s25 }
   0x5   :  { %p513_p1 = scmp.lt.u32.totalorder %s509_s28, %s807_s1 }
   0x7   :  { %p515_p2 = pnand %p513_p1, %p510_p0 }
   0x9   :  { %518 = shalt.err (!%p515_p2)
}
   0xa   :  { %s519_s10 = scalar_lea.vmem %s32_s25, 128  ;;  %p524_p4 = scmp.lt.s32.totalorder %s32_s25, %s32_s25 }
   0xb   :  { %p520_p3 = scmp.ne.s32.totalorder %s32_s25, %s519_s10  ;;  %p525_p5 = scmp.lt.s32.totalorder %s519_s10, %s519_s10 }
   0xd   :  { %p526_p6 = por %p525_p5, %p524_p4 }
   0xf   :  { %p527_p7 = pnand %p526_p6, %p520_p3 }
  0x11   :  { %530 = shalt.err (!%p527_p7)
}
  0x12   :  { %s650_s11 = smov 64   ;;  %s651_s12 = smov 4  }
  0x13   :  { %37 = dma.hbm_to_vmem [thread:$0]  %s807_s1, 128, %s32_s25, [#allocation6], %s650_s11, %s650_s11, %s651_s12  }
  0x14   :  { %s652_s15 = smov [#allocation8]   ;;  %s653_s17 = smov [#allocation2]  }
  0x15   :  { %s53_s16 = sshll.u32 %s652_s15, 4  ;;  %s22_s18 = sshll.u32 %s653_s17, 4  ;;  %s54_s16 = int_to_ptr.vmem [resolvable:$true] %s53_s16  ;;  %s23_s18 = int_to_ptr.vmem [resolvable:$true] %s22_s18 }
  0x16   :  { %s531_s21 = scalar_lea.hbm %s809_s3, 1024 }
  0x17   :  { %p532_p8 = scmp.ne.s32.totalorder %s809_s3, %s531_s21  ;;  %p535_p9 = scmp.lt.u32.totalorder %s531_s21, %s809_s3 }
  0x19   :  { %p537_p10 = pnand %p535_p9, %p532_p8 }
  0x1b   :  { %540 = shalt.err (!%p537_p10)
}
  0x1c   :  { %s541_s1 = scalar_lea.vmem %s54_s16, 1024  ;;  %p546_p12 = scmp.lt.s32.totalorder %s54_s16, %s54_s16 }
  0x1d   :  { %p542_p11 = scmp.ne.s32.totalorder %s54_s16, %s541_s1  ;;  %p547_p13 = scmp.lt.s32.totalorder %s541_s1, %s541_s1 }
  0x1f   :  { %p548_p0 = por %p547_p13, %p546_p12 }
  0x21   :  { %p549_p1 = pnand %p548_p0, %p542_p11 }
  0x23   :  { %552 = shalt.err (!%p549_p1)
}
  0x24   :  { %59 = dma.hbm_to_vmem [thread:$0]  %s809_s3, 1024, %s54_s16, [#allocation9], %s650_s11, %s650_s11, %s651_s12  }
  0x25   :  { %s553_s30 = scalar_lea.hbm %s806_s0, 128 }
  0x26   :  { %p554_p2 = scmp.ne.s32.totalorder %s806_s0, %s553_s30  ;;  %p557_p3 = scmp.lt.u32.totalorder %s553_s30, %s806_s0 }
  0x28   :  { %p559_p4 = pnand %p557_p3, %p554_p2 }
  0x2a   :  { %562 = shalt.err (!%p559_p4)
}
  0x2b   :  { %s563_s14 = scalar_lea.vmem %s23_s18, 128  ;;  %p568_p6 = scmp.lt.s32.totalorder %s23_s18, %s23_s18 }
  0x2c   :  { %p564_p5 = scmp.ne.s32.totalorder %s23_s18, %s563_s14  ;;  %p569_p7 = scmp.lt.s32.totalorder %s563_s14, %s563_s14 }
  0x2e   :  { %p570_p8 = por %p569_p7, %p568_p6 }
  0x30   :  { %p571_p9 = pnand %p570_p8, %p564_p5 }
  0x32   :  { %574 = shalt.err (!%p571_p9)
}
  0x33   :  { %25 = dma.hbm_to_vmem [thread:$0]  %s806_s0, 128, %s23_s18, [#allocation3]  }
  0x34   :  { %s654_s16 = smov [#allocation7]   ;;  %s655_s19 = smov [#allocation10]  }
  0x35   :  { %s44_s17 = sshll.u32 %s654_s16, 4  ;;  %s67_s20 = sshll.u32 %s655_s19, 4  ;;  %s45_s17 = int_to_ptr.vmem [resolvable:$true] %s44_s17  ;;  %s68_s20 = int_to_ptr.vmem [resolvable:$true] %s67_s20 }
  0x36   :  { %s575_s23 = scalar_lea.hbm %s808_s2, 128 }
  0x37   :  { %p576_p10 = scmp.ne.s32.totalorder %s808_s2, %s575_s23  ;;  %p579_p11 = scmp.lt.u32.totalorder %s575_s23, %s808_s2 }
  0x39   :  { %p581_p12 = pnand %p579_p11, %p576_p10 }
  0x3b   :  { %584 = shalt.err (!%p581_p12)
}
  0x3c   :  { %s585_s0 = scalar_lea.vmem %s45_s17, 128  ;;  %p590_p0 = scmp.lt.s32.totalorder %s45_s17, %s45_s17 }
  0x3d   :  { %p586_p13 = scmp.ne.s32.totalorder %s45_s17, %s585_s0  ;;  %p591_p1 = scmp.lt.s32.totalorder %s585_s0, %s585_s0 }
  0x3f   :  { %p592_p2 = por %p591_p1, %p590_p0 }
  0x41   :  { %p593_p3 = pnand %p592_p2, %p586_p13 }
  0x43   :  { %596 = shalt.err (!%p593_p3)
}
  0x44   :  { %47 = dma.hbm_to_vmem [thread:$0]  %s808_s2, 128, %s45_s17, [#allocation6]  }
  0x45   :  { %s597_s30 = scalar_lea.hbm %s811_s5, 1024 }
  0x46   :  { %p598_p4 = scmp.ne.s32.totalorder %s811_s5, %s597_s30  ;;  %p601_p5 = scmp.lt.u32.totalorder %s597_s30, %s811_s5 }
  0x48   :  { %p603_p6 = pnand %p601_p5, %p598_p4 }
  0x4a   :  { %606 = shalt.err (!%p603_p6)
}
  0x4b   :  { %s607_s14 = scalar_lea.vmem %s68_s20, 1024  ;;  %p612_p8 = scmp.lt.s32.totalorder %s68_s20, %s68_s20 }
  0x4c   :  { %p608_p7 = scmp.ne.s32.totalorder %s68_s20, %s607_s14  ;;  %p613_p9 = scmp.lt.s32.totalorder %s607_s14, %s607_s14 }
  0x4e   :  { %p614_p10 = por %p613_p9, %p612_p8 }
  0x50   :  { %p615_p11 = pnand %p614_p10, %p608_p7 }
  0x52   :  { %618 = shalt.err (!%p615_p11)
}
  0x53   :  { %73 = dma.hbm_to_vmem [thread:$0]  %s811_s5, 1024, %s68_s20, [#allocation9], %s650_s11, %s650_s11, %s651_s12  }
  0x54   :  { %641 = dma.done.wait [#allocation3], 128  }
  0x55   :  { %642 = vsyncadd [#allocation3], 4294967168 }
  0x56   :  { %643 = dma.done.wait [#allocation6], 256  }
  0x57   :  { %644 = vsyncadd [#allocation6], 4294967040 }
  0x58   :  { %645 = dma.done.wait [#allocation9], 2048  }
  0x59   :  { %646 = vsyncadd [#allocation9], 4294965248  ;;  %v656_v0 = vmov 0.0   ;;  %vm657_vm0 = vmmov 0   ;;  %v490_v1 = vld [vmem:[#allocation5] sm:$0xff]   ;;  %v92_v2 = vld [vmem:[#allocation2] sm:$0xff] }
  0x5a   :  { %434 = vmatprep.subr.bf16.mxu0 %v656_v0  ;;  %436 = vmatprep.mubr.msk.bf16.mxu0 %vm657_vm0, %v656_v0  ;;  %v93_v3 = vpack.c.bf16 %v92_v2, %v92_v2  ;;  %vm107_vm1 = vcmask 130048   ;;  %v491_v4 = vld [vmem:[#allocation8] sm:$0xff]   ;;  %v492_v5 = vld [vmem:[#allocation8 + $0x8] sm:$0xff]   ;;  %v493_v6 = vld [vmem:[#allocation8 + $0x10] sm:$0xff]   ;;  %s658_s16 = smov [#allocation11]  }
  0x5b   :  { %440 = vmatprep.subr.bf16.mxu1 %v656_v0  ;;  %456 = vmatprep.mubr.msk.bf16.mxu1 %vm657_vm0, %v656_v0  ;;  %v494_v7 = vld [vmem:[#allocation8 + $0x18] sm:$0xff]   ;;  %v495_v8 = vld [vmem:[#allocation8 + $0x20] sm:$0xff]   ;;  %v496_v9 = vld [vmem:[#allocation8 + $0x28] sm:$0xff]  }
  0x5c   :  { %435 = vmatpush3.bf16.msra.mxu0 %v490_v1  ;;  %441 = vmatpush3.bf16.msra.mxu1 %v491_v4  ;;  %v497_v10 = vld [vmem:[#allocation8 + $0x30] sm:$0xff]   ;;  %v498_v11 = vld [vmem:[#allocation8 + $0x38] sm:$0xff]   ;;  %v499_v12 = vld [vmem:[#allocation10] sm:$0xff]  }
  0x5d   :  { %460 = vmatprep.subr.bf16.mxu0 %v656_v0  ;;  %442 = vmatprep.subr.bf16.mxu1 %v656_v0  ;;  %v500_v13 = vld [vmem:[#allocation10 + $0x8] sm:$0xff]   ;;  %v501_v14 = vld [vmem:[#allocation10 + $0x10] sm:$0xff]   ;;  %v502_v15 = vld [vmem:[#allocation10 + $0x18] sm:$0xff]  }
  0x5e   :  { %v503_v16 = vld [vmem:[#allocation10 + $0x20] sm:$0xff]   ;;  %v504_v17 = vld [vmem:[#allocation10 + $0x28] sm:$0xff]   ;;  %v393_v18 = vld [vmem:[#allocation7] ss:$0 sm:$0xff] }
  0x5f   :  { %437 = vmatmul.mubr.msk.bf16.vlgmr.msra.gmra.mrb[0].mxu0 %vm107_vm1, %v93_v3  ;;  %v505_v26 = vld [vmem:[#allocation10 + $0x30] sm:$0xff]   ;;  %v506_v27 = vld [vmem:[#allocation10 + $0x38] sm:$0xff]   ;;  %v396_v28 = vld [vmem:[%s810_s4] ss:$0 sm:$0xff]  ;;  %s382_s4 = sshll.u32 %s658_s16, 4  ;;  %s383_s4 = int_to_ptr.vmem [resolvable:$true] %s382_s4 }
  0x60   :  { %476 = vmatprep.mubr.msk.bf16.mxu0 %vm657_vm0, %v656_v0  ;;  %443 = vmatpush3.bf16.msra.mxu1 %v492_v5  ;;  %v405_v36 = vld [vmem:[%s812_s6] ss:$0 sm:$0xff]  ;;  %s619_s17 = scalar_lea.vmem %s383_s4, 64  ;;  %p624_p13 = scmp.lt.s32.totalorder %s383_s4, %s383_s4 }
  0x61   :  { %444 = vmatprep.subr.bf16.mxu1 %v656_v0  ;;  %461 = vmatpush3.bf16.msra.mxu0 %v499_v12  ;;  %p620_p12 = scmp.ne.s32.totalorder %s383_s4, %s619_s17  ;;  %p625_p0 = scmp.lt.s32.totalorder %s619_s17, %s619_s17 }
  0x62   :  { %462 = vmatprep.subr.bf16.mxu0 %v656_v0 }
  0x63   :  { %p626_p1 = por %p625_p0, %p624_p13 }
  0x64   :  { %445 = vmatpush3.bf16.msra.mxu1 %v493_v6 }
  0x65   :  { %446 = vmatprep.subr.bf16.mxu1 %v656_v0  ;;  %463 = vmatpush3.bf16.msra.mxu0 %v500_v13  ;;  %p627_p2 = pnand %p626_p1, %p620_p12 }
  0x66   :  { %464 = vmatprep.subr.bf16.mxu0 %v656_v0 }
  0x68   :  { %447 = vmatpush3.bf16.msra.mxu1 %v494_v7 }
  0x69   :  { %448 = vmatprep.subr.bf16.mxu1 %v656_v0  ;;  %465 = vmatpush3.bf16.msra.mxu0 %v501_v14 }
  0x6a   :  { %466 = vmatprep.subr.bf16.mxu0 %v656_v0 }
  0x6c   :  { %449 = vmatpush3.bf16.msra.mxu1 %v495_v8 }
  0x6d   :  { %450 = vmatprep.subr.bf16.mxu1 %v656_v0  ;;  %467 = vmatpush3.bf16.msra.mxu0 %v502_v15 }
  0x6e   :  { %468 = vmatprep.subr.bf16.mxu0 %v656_v0 }
  0x70   :  { %451 = vmatpush3.bf16.msra.mxu1 %v496_v9 }
  0x71   :  { %452 = vmatprep.subr.bf16.mxu1 %v656_v0  ;;  %469 = vmatpush3.bf16.msra.mxu0 %v503_v16 }
  0x72   :  { %470 = vmatprep.subr.bf16.mxu0 %v656_v0 }
  0x74   :  { %453 = vmatpush3.bf16.msra.mxu1 %v497_v10 }
  0x75   :  { %454 = vmatprep.subr.bf16.mxu1 %v656_v0  ;;  %471 = vmatpush3.bf16.msra.mxu0 %v504_v17 }
  0x76   :  { %472 = vmatprep.subr.bf16.mxu0 %v656_v0 }
  0x78   :  { %455 = vmatpush3.bf16.msra.mxu1 %v498_v11 }
  0x79   :  { %473 = vmatpush3.bf16.msra.mxu0 %v505_v26 }
  0x7a   :  { %474 = vmatprep.subr.bf16.mxu0 %v656_v0 }
  0x7d   :  { %475 = vmatpush3.bf16.msra.mxu0 %v506_v27 }
 0x132   :  { %v145_v19 = vpop.f32.mrb[0].mxu0 }
 0x133   :  { %v146_v20 = vadd.f32 %v393_v18, %v145_v19  ;;  %v438_v21 = vpop.f32.mrb[1].mxu0 }
 0x134   :  { %v148_v22 = vpop.f32.mrb[2].mxu0 }
 0x135   :  { %v151_v23 = vmax.f32 %v146_v20, 0.0  ;;  %v439_v24 = vpop.f32.mrb[3].mxu0 }
 0x137   :  { %v152_v25 = vpack.c.bf16 %v151_v23, %v151_v23 }
 0x139   :  { %457 = vmatmul.mubr.bf16.vlgmr.msra.gmra.mrb[0].mxu1 %v152_v25 }
 0x20c   :  { %v256_v29 = vpop.f32.mrb[0].mxu1 }
 0x20d   :  { %v257_v30 = vadd.f32 %v396_v28, %v256_v29  ;;  %v458_v31 = vpop.f32.mrb[1].mxu1 }
 0x20e   :  { %v259_v32 = vpop.f32.mrb[2].mxu1 }
 0x20f   :  { %v262_v33 = vmax.f32 %v257_v30, 0.0  ;;  %v459_v34 = vpop.f32.mrb[3].mxu1 }
 0x211   :  { %v263_v35 = vpack.c.bf16 %v262_v33, %v262_v33 }
 0x213   :  { %477 = vmatmul.mubr.bf16.vlgmr.msra.gmra.mrb[4].mxu0 %v263_v35 }
 0x2e6   :  { %v367_v37 = vpop.f32.mrb[4].mxu0 }
 0x2e7   :  { %v368_v38 = vadd.f32 %v405_v36, %v367_v37  ;;  %v478_v39 = vpop.f32.mrb[5].mxu0 }
 0x2e8   :  { %v370_v40 = vpop.f32.mrb[6].mxu0 }
 0x2e9   :  { %507 = vtanh.f32 %v368_v38  ;;  %v479_v41 = vpop.f32.mrb[7].mxu0 }
 0x2f3   :  { %v508_v42 = vpop.eup %507 }
 0x2f4   :  { %v374_v43 = vpack.c.bf16 %v508_v42, %v508_v42 }
 0x2f6   :  { %375 = vst [vmem:[#allocation11] sm:$0xf] %v374_v43 }
 0x2f7   :  { %630 = shalt.err (!%p627_p2)
}
 0x2f8   :  { %s631_s20 = scalar_lea.hbm %s813_s7, 64 }
 0x2f9   :  { %p632_p3 = scmp.ne.s32.totalorder %s813_s7, %s631_s20  ;;  %p635_p4 = scmp.lt.u32.totalorder %s631_s20, %s813_s7 }
 0x2fb   :  { %p637_p5 = pnand %p635_p4, %p632_p3 }
 0x2fd   :  { %640 = shalt.err (!%p637_p5)
}
 0x2fe   :  { %385 = dma.vmem_to_hbm [thread:$0]  %s383_s4, 64, %s813_s7, [#allocation4]  }
 0x2ff   :  { %647 = dma.done.wait [#allocation4], 64  }
 0x300   :  { %648 = vsyncadd [#allocation4], 4294967232 }
 0x301   :  { %389 = vsyncpa [#allocation3], 1 }
 0x302   :  { %390 = vsyncpa [#allocation6], 1 }
 0x303   :  { %391 = vsyncpa [#allocation9], 1 }
 0x304   :  { %392 = vsyncpa [#allocation4], 1 }

// kernel: tpu_custom_call.1
= control target key start
LH: loop header
LB: loop body
LE: loop exit
PB: predicated region body
PF: predicated region fallthrough
CT: control target
= control target key end

     0   :  { %12 = vsyncpa [#allocation3], 0  ;;  %s806_s0 = inlined_call_operand.hbm [shape: f32[8,16], index: 0, kind: input, shape index: {}]   ;;  %s807_s1 = inlined_call_operand.hbm [shape: bf16[16,128], index: 1, kind: input, shape index: {}]   ;;  %s808_s2 = inlined_call_operand.hbm [shape: f32[8,128], index: 2, kind: input, shape index: {}]   ;;  %s809_s3 = inlined_call_operand.hbm [shape: bf16[128,128], index: 3, kind: input, shape index: {}]   ;;  %s810_s4 = inlined_call_operand.vmem [shape: f32[8,128], index: 4, kind: input, shape index: {}]   ;;  %s811_s5 = inlined_call_operand.hbm [shape: bf16[128,128], index: 5, kind: input, shape index: {}]   ;;  %s812_s6 = inlined_call_operand.vmem [shape: f32[8,128], index: 6, kind: input, shape index: {}]   ;;  %s813_s7 = inlined_call_operand.hbm [shape: bf16[8,128], index: 7, kind: output, shape index: {}]  }
   0x1   :  { %13 = vsyncpa [#allocation6], 0 }
   0x2   :  { %14 = vsyncpa [#allocation9], 0 }
   0x3   :  { %15 = vsyncpa [#allocation4], 0  ;;  %s649_s24 = smov [#allocation5]   ;;  %s509_s28 = scalar_lea.hbm %s807_s1, 128 }
   0x4   :  { %s31_s25 = sshll.u32 %s649_s24, 4  ;;  %p510_p0 = scmp.ne.s32.totalorder %s807_s1, %s509_s28  ;;  %s32_s25 = int_to_ptr.vmem [resolvable:$true] %s31_s25 }
   0x5   :  { %p513_p1 = scmp.lt.u32.totalorder %s509_s28, %s807_s1 }
   0x7   :  { %p515_p2 = pnand %p513_p1, %p510_p0 }
   0x9   :  { %518 = shalt.err (!%p515_p2)
}
   0xa   :  { %s519_s10 = scalar_lea.vmem %s32_s25, 128  ;;  %p524_p4 = scmp.lt.s32.totalorder %s32_s25, %s32_s25 }
   0xb   :  { %p520_p3 = scmp.ne.s32.totalorder %s32_s25, %s519_s10  ;;  %p525_p5 = scmp.lt.s32.totalorder %s519_s10, %s519_s10 }
   0xd   :  { %p526_p6 = por %p525_p5, %p524_p4 }
   0xf   :  { %p527_p7 = pnand %p526_p6, %p520_p3 }
  0x11   :  { %530 = shalt.err (!%p527_p7)
}
  0x12   :  { %s650_s11 = smov 64   ;;  %s651_s12 = smov 4  }
  0x13   :  { %37 = dma.hbm_to_vmem [thread:$0]  %s807_s1, 128, %s32_s25, [#allocation6], %s650_s11, %s650_s11, %s651_s12  }
  0x14   :  { %s652_s15 = smov [#allocation8]   ;;  %s653_s17 = smov [#allocation2]  }
  0x15   :  { %s53_s16 = sshll.u32 %s652_s15, 4  ;;  %s22_s18 = sshll.u32 %s653_s17, 4  ;;  %s54_s16 = int_to_ptr.vmem [resolvable:$true] %s53_s16  ;;  %s23_s18 = int_to_ptr.vmem [resolvable:$true] %s22_s18 }
  0x16   :  { %s531_s21 = scalar_lea.hbm %s809_s3, 1024 }
  0x17   :  { %p532_p8 = scmp.ne.s32.totalorder %s809_s3, %s531_s21  ;;  %p535_p9 = scmp.lt.u32.totalorder %s531_s21, %s809_s3 }
  0x19   :  { %p537_p10 = pnand %p535_p9, %p532_p8 }
  0x1b   :  { %540 = shalt.err (!%p537_p10)
}
  0x1c   :  { %s541_s1 = scalar_lea.vmem %s54_s16, 1024  ;;  %p546_p12 = scmp.lt.s32.totalorder %s54_s16, %s54_s16 }
  0x1d   :  { %p542_p11 = scmp.ne.s32.totalorder %s54_s16, %s541_s1  ;;  %p547_p13 = scmp.lt.s32.totalorder %s541_s1, %s541_s1 }
  0x1f   :  { %p548_p0 = por %p547_p13, %p546_p12 }
  0x21   :  { %p549_p1 = pnand %p548_p0, %p542_p11 }
  0x23   :  { %552 = shalt.err (!%p549_p1)
}
  0x24   :  { %59 = dma.hbm_to_vmem [thread:$0]  %s809_s3, 1024, %s54_s16, [#allocation9], %s650_s11, %s650_s11, %s651_s12  }
  0x25   :  { %s553_s30 = scalar_lea.hbm %s806_s0, 128 }
  0x26   :  { %p554_p2 = scmp.ne.s32.totalorder %s806_s0, %s553_s30  ;;  %p557_p3 = scmp.lt.u32.totalorder %s553_s30, %s806_s0 }
  0x28   :  { %p559_p4 = pnand %p557_p3, %p554_p2 }
  0x2a   :  { %562 = shalt.err (!%p559_p4)
}
  0x2b   :  { %s563_s14 = scalar_lea.vmem %s23_s18, 128  ;;  %p568_p6 = scmp.lt.s32.totalorder %s23_s18, %s23_s18 }
  0x2c   :  { %p564_p5 = scmp.ne.s32.totalorder %s23_s18, %s563_s14  ;;  %p569_p7 = scmp.lt.s32.totalorder %s563_s14, %s563_s14 }
  0x2e   :  { %p570_p8 = por %p569_p7, %p568_p6 }
  0x30   :  { %p571_p9 = pnand %p570_p8, %p564_p5 }
  0x32   :  { %574 = shalt.err (!%p571_p9)
}
  0x33   :  { %25 = dma.hbm_to_vmem [thread:$0]  %s806_s0, 128, %s23_s18, [#allocation3]  }
  0x34   :  { %s654_s16 = smov [#allocation7]   ;;  %s655_s19 = smov [#allocation10]  }
  0x35   :  { %s44_s17 = sshll.u32 %s654_s16, 4  ;;  %s67_s20 = sshll.u32 %s655_s19, 4  ;;  %s45_s17 = int_to_ptr.vmem [resolvable:$true] %s44_s17  ;;  %s68_s20 = int_to_ptr.vmem [resolvable:$true] %s67_s20 }
  0x36   :  { %s575_s23 = scalar_lea.hbm %s808_s2, 128 }
  0x37   :  { %p576_p10 = scmp.ne.s32.totalorder %s808_s2, %s575_s23  ;;  %p579_p11 = scmp.lt.u32.totalorder %s575_s23, %s808_s2 }
  0x39   :  { %p581_p12 = pnand %p579_p11, %p576_p10 }
  0x3b   :  { %584 = shalt.err (!%p581_p12)
}
  0x3c   :  { %s585_s0 = scalar_lea.vmem %s45_s17, 128  ;;  %p590_p0 = scmp.lt.s32.totalorder %s45_s17, %s45_s17 }
  0x3d   :  { %p586_p13 = scmp.ne.s32.totalorder %s45_s17, %s585_s0  ;;  %p591_p1 = scmp.lt.s32.totalorder %s585_s0, %s585_s0 }
  0x3f   :  { %p592_p2 = por %p591_p1, %p590_p0 }
  0x41   :  { %p593_p3 = pnand %p592_p2, %p586_p13 }
  0x43   :  { %596 = shalt.err (!%p593_p3)
}
  0x44   :  { %47 = dma.hbm_to_vmem [thread:$0]  %s808_s2, 128, %s45_s17, [#allocation6]  }
  0x45   :  { %s597_s30 = scalar_lea.hbm %s811_s5, 1024 }
  0x46   :  { %p598_p4 = scmp.ne.s32.totalorder %s811_s5, %s597_s30  ;;  %p601_p5 = scmp.lt.u32.totalorder %s597_s30, %s811_s5 }
  0x48   :  { %p603_p6 = pnand %p601_p5, %p598_p4 }
  0x4a   :  { %606 = shalt.err (!%p603_p6)
}
  0x4b   :  { %s607_s14 = scalar_lea.vmem %s68_s20, 1024  ;;  %p612_p8 = scmp.lt.s32.totalorder %s68_s20, %s68_s20 }
  0x4c   :  { %p608_p7 = scmp.ne.s32.totalorder %s68_s20, %s607_s14  ;;  %p613_p9 = scmp.lt.s32.totalorder %s607_s14, %s607_s14 }
  0x4e   :  { %p614_p10 = por %p613_p9, %p612_p8 }
  0x50   :  { %p615_p11 = pnand %p614_p10, %p608_p7 }
  0x52   :  { %618 = shalt.err (!%p615_p11)
}
  0x53   :  { %73 = dma.hbm_to_vmem [thread:$0]  %s811_s5, 1024, %s68_s20, [#allocation9], %s650_s11, %s650_s11, %s651_s12  }
  0x54   :  { %641 = dma.done.wait [#allocation3], 128  }
  0x55   :  { %642 = vsyncadd [#allocation3], 4294967168 }
  0x56   :  { %643 = dma.done.wait [#allocation6], 256  }
  0x57   :  { %644 = vsyncadd [#allocation6], 4294967040 }
  0x58   :  { %645 = dma.done.wait [#allocation9], 2048  }
  0x59   :  { %646 = vsyncadd [#allocation9], 4294965248  ;;  %v656_v0 = vmov 0.0   ;;  %vm657_vm0 = vmmov 0   ;;  %v490_v1 = vld [vmem:[#allocation5] sm:$0xff]   ;;  %v92_v2 = vld [vmem:[#allocation2] sm:$0xff] }
  0x5a   :  { %434 = vmatprep.subr.bf16.mxu0 %v656_v0  ;;  %436 = vmatprep.mubr.msk.bf16.mxu0 %vm657_vm0, %v656_v0  ;;  %v93_v3 = vpack.c.bf16 %v92_v2, %v92_v2  ;;  %vm107_vm1 = vcmask 130048   ;;  %v491_v4 = vld [vmem:[#allocation8] sm:$0xff]   ;;  %v492_v5 = vld [vmem:[#allocation8 + $0x8] sm:$0xff]   ;;  %v493_v6 = vld [vmem:[#allocation8 + $0x10] sm:$0xff]   ;;  %s658_s16 = smov [#allocation11]  }
  0x5b   :  { %440 = vmatprep.subr.bf16.mxu1 %v656_v0  ;;  %456 = vmatprep.mubr.msk.bf16.mxu1 %vm657_vm0, %v656_v0  ;;  %v494_v7 = vld [vmem:[#allocation8 + $0x18] sm:$0xff]   ;;  %v495_v8 = vld [vmem:[#allocation8 + $0x20] sm:$0xff]   ;;  %v496_v9 = vld [vmem:[#allocation8 + $0x28] sm:$0xff]  }
  0x5c   :  { %435 = vmatpush3.bf16.msra.mxu0 %v490_v1  ;;  %441 = vmatpush3.bf16.msra.mxu1 %v491_v4  ;;  %v497_v10 = vld [vmem:[#allocation8 + $0x30] sm:$0xff]   ;;  %v498_v11 = vld [vmem:[#allocation8 + $0x38] sm:$0xff]   ;;  %v499_v12 = vld [vmem:[#allocation10] sm:$0xff]  }
  0x5d   :  { %460 = vmatprep.subr.bf16.mxu0 %v656_v0  ;;  %442 = vmatprep.subr.bf16.mxu1 %v656_v0  ;;  %v500_v13 = vld [vmem:[#allocation10 + $0x8] sm:$0xff]   ;;  %v501_v14 = vld [vmem:[#allocation10 + $0x10] sm:$0xff]   ;;  %v502_v15 = vld [vmem:[#allocation10 + $0x18] sm:$0xff]  }
  0x5e   :  { %v503_v16 = vld [vmem:[#allocation10 + $0x20] sm:$0xff]   ;;  %v504_v17 = vld [vmem:[#allocation10 + $0x28] sm:$0xff]   ;;  %v393_v18 = vld [vmem:[#allocation7] ss:$0 sm:$0xff] }
  0x5f   :  { %437 = vmatmul.mubr.msk.bf16.vlgmr.msra.gmra.mrb[0].mxu0 %vm107_vm1, %v93_v3  ;;  %v505_v26 = vld [vmem:[#allocation10 + $0x30] sm:$0xff]   ;;  %v506_v27 = vld [vmem:[#allocation10 + $0x38] sm:$0xff]   ;;  %v396_v28 = vld [vmem:[%s810_s4] ss:$0 sm:$0xff]  ;;  %s382_s4 = sshll.u32 %s658_s16, 4  ;;  %s383_s4 = int_to_ptr.vmem [resolvable:$true] %s382_s4 }
  0x60   :  { %476 = vmatprep.mubr.msk.bf16.mxu0 %vm657_vm0, %v656_v0  ;;  %443 = vmatpush3.bf16.msra.mxu1 %v492_v5  ;;  %v405_v36 = vld [vmem:[%s812_s6] ss:$0 sm:$0xff]  ;;  %s619_s17 = scalar_lea.vmem %s383_s4, 64  ;;  %p624_p13 = scmp.lt.s32.totalorder %s383_s4, %s383_s4 }
  0x61   :  { %444 = vmatprep.subr.bf16.mxu1 %v656_v0  ;;  %461 = vmatpush3.bf16.msra.mxu0 %v499_v12  ;;  %p620_p12 = scmp.ne.s32.totalorder %s383_s4, %s619_s17  ;;  %p625_p0 = scmp.lt.s32.totalorder %s619_s17, %s619_s17 }
  0x62   :  { %462 = vmatprep.subr.bf16.mxu0 %v656_v0 }
  0x63   :  { %p626_p1 = por %p625_p0, %p624_p13 }
  0x64   :  { %445 = vmatpush3.bf16.msra.mxu1 %v493_v6 }
  0x65   :  { %446 = vmatprep.subr.bf16.mxu1 %v656_v0  ;;  %463 = vmatpush3.bf16.msra.mxu0 %v500_v13  ;;  %p627_p2 = pnand %p626_p1, %p620_p12 }
  0x66   :  { %464 = vmatprep.subr.bf16.mxu0 %v656_v0 }
  0x68   :  { %447 = vmatpush3.bf16.msra.mxu1 %v494_v7 }
  0x69   :  { %448 = vmatprep.subr.bf16.mxu1 %v656_v0  ;;  %465 = vmatpush3.bf16.msra.mxu0 %v501_v14 }
  0x6a   :  { %466 = vmatprep.subr.bf16.mxu0 %v656_v0 }
  0x6c   :  { %449 = vmatpush3.bf16.msra.mxu1 %v495_v8 }
  0x6d   :  { %450 = vmatprep.subr.bf16.mxu1 %v656_v0  ;;  %467 = vmatpush3.bf16.msra.mxu0 %v502_v15 }
  0x6e   :  { %468 = vmatprep.subr.bf16.mxu0 %v656_v0 }
  0x70   :  { %451 = vmatpush3.bf16.msra.mxu1 %v496_v9 }
  0x71   :  { %452 = vmatprep.subr.bf16.mxu1 %v656_v0  ;;  %469 = vmatpush3.bf16.msra.mxu0 %v503_v16 }
  0x72   :  { %470 = vmatprep.subr.bf16.mxu0 %v656_v0 }
  0x74   :  { %453 = vmatpush3.bf16.msra.mxu1 %v497_v10 }
  0x75   :  { %454 = vmatprep.subr.bf16.mxu1 %v656_v0  ;;  %471 = vmatpush3.bf16.msra.mxu0 %v504_v17 }
  0x76   :  { %472 = vmatprep.subr.bf16.mxu0 %v656_v0 }
  0x78   :  { %455 = vmatpush3.bf16.msra.mxu1 %v498_v11 }
  0x79   :  { %473 = vmatpush3.bf16.msra.mxu0 %v505_v26 }
  0x7a   :  { %474 = vmatprep.subr.bf16.mxu0 %v656_v0 }
  0x7d   :  { %475 = vmatpush3.bf16.msra.mxu0 %v506_v27 }
 0x132   :  { %v145_v19 = vpop.f32.mrb[0].mxu0 }
 0x133   :  { %v146_v20 = vadd.f32 %v393_v18, %v145_v19  ;;  %v438_v21 = vpop.f32.mrb[1].mxu0 }
 0x134   :  { %v148_v22 = vpop.f32.mrb[2].mxu0 }
 0x135   :  { %v151_v23 = vmax.f32 %v146_v20, 0.0  ;;  %v439_v24 = vpop.f32.mrb[3].mxu0 }
 0x137   :  { %v152_v25 = vpack.c.bf16 %v151_v23, %v151_v23 }
 0x139   :  { %457 = vmatmul.mubr.bf16.vlgmr.msra.gmra.mrb[0].mxu1 %v152_v25 }
 0x20c   :  { %v256_v29 = vpop.f32.mrb[0].mxu1 }
 0x20d   :  { %v257_v30 = vadd.f32 %v396_v28, %v256_v29  ;;  %v458_v31 = vpop.f32.mrb[1].mxu1 }
 0x20e   :  { %v259_v32 = vpop.f32.mrb[2].mxu1 }
 0x20f   :  { %v262_v33 = vmax.f32 %v257_v30, 0.0  ;;  %v459_v34 = vpop.f32.mrb[3].mxu1 }
 0x211   :  { %v263_v35 = vpack.c.bf16 %v262_v33, %v262_v33 }
 0x213   :  { %477 = vmatmul.mubr.bf16.vlgmr.msra.gmra.mrb[4].mxu0 %v263_v35 }
 0x2e6   :  { %v367_v37 = vpop.f32.mrb[4].mxu0 }
 0x2e7   :  { %v368_v38 = vadd.f32 %v405_v36, %v367_v37  ;;  %v478_v39 = vpop.f32.mrb[5].mxu0 }
 0x2e8   :  { %v370_v40 = vpop.f32.mrb[6].mxu0 }
 0x2e9   :  { %507 = vtanh.f32 %v368_v38  ;;  %v479_v41 = vpop.f32.mrb[7].mxu0 }
 0x2f3   :  { %v508_v42 = vpop.eup %507 }
 0x2f4   :  { %v374_v43 = vpack.c.bf16 %v508_v42, %v508_v42 }
 0x2f6   :  { %375 = vst [vmem:[#allocation11] sm:$0xf] %v374_v43 }
 0x2f7   :  { %630 = shalt.err (!%p627_p2)
}
 0x2f8   :  { %s631_s20 = scalar_lea.hbm %s813_s7, 64 }
 0x2f9   :  { %p632_p3 = scmp.ne.s32.totalorder %s813_s7, %s631_s20  ;;  %p635_p4 = scmp.lt.u32.totalorder %s631_s20, %s813_s7 }
 0x2fb   :  { %p637_p5 = pnand %p635_p4, %p632_p3 }
 0x2fd   :  { %640 = shalt.err (!%p637_p5)
}
 0x2fe   :  { %385 = dma.vmem_to_hbm [thread:$0]  %s383_s4, 64, %s813_s7, [#allocation4]  }
 0x2ff   :  { %647 = dma.done.wait [#allocation4], 64  }
 0x300   :  { %648 = vsyncadd [#allocation4], 4294967232 }
 0x301   :  { %389 = vsyncpa [#allocation3], 1 }
 0x302   :  { %390 = vsyncpa [#allocation6], 1 }
 0x303   :  { %391 = vsyncpa [#allocation9], 1 }
 0x304   :  { %392 = vsyncpa [#allocation4], 1 }

</bundles_post_ra>
